<compile_context>
chip_gen: v6e
topology: v6e:2x2x1
jax: 0.10.0
libtpu: 0.0.40
codegen_flags: <defaults>
</compile_context>

<pallas_src>
import functools

import jax
import jax.numpy as jnp
from jax.experimental import pallas as pl
from jax.experimental.pallas import tpu as pltpu


def _postprocess_rows_kernel(boxes_ref, out_ref, *, img_w, img_h):
    """Native layout: (N, 4); N on sublanes, lanes = (cx, cy, w, h)."""
    b = boxes_ref[...].astype(jnp.float32)   # in-kernel cast (free in the VPU slot)
    cx = b[:, 0:1]
    cy = b[:, 1:2]
    hw = 0.5 * b[:, 2:3]
    hh = 0.5 * b[:, 3:4]
    # Clamp to [0, 1] then scale (matches the PyTorch module's boxes.clamp(0, 1) * scale).
    # Direct slice stores: no concatenate, no sublane-shuffle temporary.
    out_ref[:, 0:1] = jnp.clip(cx - hw, 0.0, 1.0) * img_w
    out_ref[:, 1:2] = jnp.clip(cy - hh, 0.0, 1.0) * img_h
    out_ref[:, 2:3] = jnp.clip(cx + hw, 0.0, 1.0) * img_w
    out_ref[:, 3:4] = jnp.clip(cy + hh, 0.0, 1.0) * img_h


def _postprocess_lane_kernel(flat_ref, out_ref, *, img_w, img_h):
    """Lane-dense layout: (rows, 128); each row = 32 boxes interleaved (cx,cy,w,h)*32."""
    v = flat_ref[...].astype(jnp.float32)    # in-kernel cast
    # Pair each box's (w, h) with its (cx, cy) via lane rotations (XLU slot, not VPU).
    # pltpu.roll follows jnp.roll semantics: roll(v, s)[j] = v[(j - s) % 128].
    wh_at_c = pltpu.roll(v, shift=126, axis=1)   # == shift -2: lane j reads lane j+2 (w,h onto cx,cy)
    c_at_wh = pltpu.roll(v, shift=2, axis=1)     # lane j reads lane j-2 (cx,cy onto w,h)
    lo = jnp.clip(v - 0.5 * wh_at_c, 0.0, 1.0)   # x0 / y0, valid where lane % 4 < 2
    hi = jnp.clip(c_at_wh + 0.5 * v, 0.0, 1.0)   # x1 / y1, valid where lane % 4 >= 2
    lane = jax.lax.broadcasted_iota(jnp.int32, v.shape, 1)
    xyxy = jnp.where(lane % 4 < 2, lo, hi)
    scale = jnp.where(lane % 2 == 0, img_w, img_h)   # per-lane [w, h, w, h, ...]
    out_ref[...] = xyxy * scale                      # single unmasked, lane-dense store


def _reference(pred_boxes, target_size):
    """Pure-jnp reference (also usable as a fusable small-N fast path)."""
    img_h, img_w = target_size
    cx, cy, w, h = jnp.split(pred_boxes.astype(jnp.float32), 4, axis=-1)
    xyxy = jnp.concatenate(
        [cx - 0.5 * w, cy - 0.5 * h, cx + 0.5 * w, cy + 0.5 * h], axis=-1
    )
    xyxy = jnp.clip(xyxy, 0.0, 1.0)
    scale = jnp.array([img_w, img_h, img_w, img_h], dtype=jnp.float32)
    return xyxy * scale[None, :]


def tracker_post_process(pred_boxes: jax.Array, target_size,
                         *, row_block: int = 4096,
                         jnp_small_n_threshold: int = 0) -> jax.Array:
    """JAX/Pallas equivalent of TrackerPostProcess.forward (boxes only).

    pred_boxes:  (N, 4), any float dtype, normalized cxcywh (cast to f32 inside the kernel).
    target_size: (img_h, img_w) python scalars.
    returns:     (N, 4) float32 xyxy boxes in absolute image coordinates.

    jnp_small_n_threshold: if N <= threshold, skip the kernel dispatch entirely and let XLA
    fuse the trivial math (review suggestion); 0 by default so the Pallas path is always used.
    """
    # TODO(synk): the PyTorch module mutates an `Instances` container; here we only compute
    # and return the `boxes` tensor (the numeric work).
    n = pred_boxes.shape[0]
    img_h, img_w = target_size

    if n == 0:
        # Empty-track branch of the PyTorch module (no kernel launch).
        return jnp.zeros((0, 4), dtype=jnp.float32)

    if n <= jnp_small_n_threshold:
        return _reference(pred_boxes, target_size)

    kw = dict(img_w=float(img_w), img_h=float(img_h))

    if n % 32 == 0:
        # Lane-dense path: free row-major reshape (N, 4) -> (N//32, 128).
        rows = n // 32
        flat = pred_boxes.reshape(rows, 128)
        lane_kernel = functools.partial(_postprocess_lane_kernel, **kw)
        if rows <= row_block:
            # Whole array as one VMEM block, single invocation (no grid).
            out = pl.pallas_call(
                lane_kernel,
                out_shape=jax.ShapeDtypeStruct((rows, 128), jnp.float32),
                in_specs=[pl.BlockSpec(memory_space=pltpu.MemorySpace.VMEM)],
                out_specs=pl.BlockSpec(memory_space=pltpu.MemorySpace.VMEM),
            )(flat)
        else:
            # Very large N: tile the row axis.  (row_block, 128) f32 blocks ~2 MiB each,
            # double-buffered in+out << default scoped VMEM on v5e/v6e/v7x.
            out = pl.pallas_call(
                lane_kernel,
                out_shape=jax.ShapeDtypeStruct((rows, 128), jnp.float32),
                grid=(pl.cdiv(rows, row_block),),
                in_specs=[pl.BlockSpec((row_block, 128), lambda i: (i, 0))],
                out_specs=pl.BlockSpec((row_block, 128), lambda i: (i, 0)),
                compiler_params=pltpu.CompilerParams(
                    dimension_semantics=("parallel",)),
            )(flat)
        return out.reshape(n, 4)

    # Fallback: native (N, 4) in a single full-array block (realistic track counts are tiny,
    # so launch overhead dominates; the 4-lane width is irrelevant here).
    rows_kernel = functools.partial(_postprocess_rows_kernel, **kw)
    return pl.pallas_call(
        rows_kernel,
        out_shape=jax.ShapeDtypeStruct((n, 4), jnp.float32),
        in_specs=[pl.BlockSpec(memory_space=pltpu.MemorySpace.VMEM)],
        out_specs=pl.BlockSpec(memory_space=pltpu.MemorySpace.VMEM),
    )(pred_boxes)


if __name__ == "__main__":
    target_size = (480, 640)  # (img_h, img_w)
    key = jax.random.PRNGKey(0)
    k0, k1, k2 = jax.random.split(key, 3)

    # --- Realistic small track count (N % 32 != 0): native (N, 4) single-block kernel. ---
    n_small = 10
    boxes_small = jax.random.uniform(k0, (n_small, 4), dtype=jnp.float32)
    out_small = jax.block_until_ready(tracker_post_process(boxes_small, target_size))
    assert out_small.shape == (n_small, 4) and out_small.dtype == jnp.float32
    assert jnp.allclose(out_small, _reference(boxes_small, target_size), atol=1e-4, rtol=1e-4)

    # --- Lane-dense path (N % 32 == 0); bf16 input exercises the in-kernel cast. ---
    n_mid = 512
    boxes_mid = jax.random.uniform(k1, (n_mid, 4), dtype=jnp.float32).astype(jnp.bfloat16)
    out_mid = jax.block_until_ready(tracker_post_process(boxes_mid, target_size))
    assert out_mid.shape == (n_mid, 4) and out_mid.dtype == jnp.float32
    assert jnp.allclose(out_mid, _reference(boxes_mid, target_size), atol=1e-3, rtol=1e-3)

    # --- Tiled lane-dense path (grid + "parallel"), small row_block to exercise it. ---
    n_big = 2048  # rows = 64, row_block = 8 -> grid of 8
    boxes_big = jax.random.uniform(k2, (n_big, 4), dtype=jnp.float32)
    out_big = jax.block_until_ready(
        tracker_post_process(boxes_big, target_size, row_block=8))
    assert out_big.shape == (n_big, 4)
    assert jnp.allclose(out_big, _reference(boxes_big, target_size), atol=1e-4, rtol=1e-4)

    # --- Empty-track branch (matches torch.zeros((0, 4))). ---
    empty = tracker_post_process(jnp.zeros((0, 4), jnp.float32), target_size)
    assert empty.shape == (0, 4)

    print("KERNEL_OK")
</pallas_src>

<mosaic_0001>
module attributes {stable_mosaic.version = 11 : i64} {
  func.func @_postprocess_rows_kernel(%arg0: memref<10x4xf32, #tpu.memory_space<vmem>>, %arg1: memref<10x4xf32, #tpu.memory_space<vmem>>) attributes {dimension_semantics = [], scalar_prefetch = 0 : i64, scratch_operands = 0 : i64, tpu.core_type = #tpu.core_type<tc>} {
    %c0 = arith.constant 0 : index
    %c0_0 = arith.constant 0 : index
    %0 = vector.load %arg0[%c0, %c0_0] : memref<10x4xf32, #tpu.memory_space<vmem>>, vector<10x4xf32>
    %1 = vector.extract_strided_slice %0 {offsets = [0, 0], sizes = [10, 1], strides = [1, 1]} : vector<10x4xf32> to vector<10x1xf32>
    %2 = vector.extract_strided_slice %0 {offsets = [0, 1], sizes = [10, 1], strides = [1, 1]} : vector<10x4xf32> to vector<10x1xf32>
    %3 = vector.extract_strided_slice %0 {offsets = [0, 2], sizes = [10, 1], strides = [1, 1]} : vector<10x4xf32> to vector<10x1xf32>
    %cst = arith.constant 5.000000e-01 : f32
    %4 = vector.broadcast %cst : f32 to vector<10x1xf32>
    %5 = arith.mulf %4, %3 : vector<10x1xf32>
    %6 = vector.extract_strided_slice %0 {offsets = [0, 3], sizes = [10, 1], strides = [1, 1]} : vector<10x4xf32> to vector<10x1xf32>
    %cst_1 = arith.constant 5.000000e-01 : f32
    %7 = vector.broadcast %cst_1 : f32 to vector<10x1xf32>
    %8 = arith.mulf %7, %6 : vector<10x1xf32>
    %9 = arith.subf %1, %5 : vector<10x1xf32>
    %cst_2 = arith.constant 0.000000e+00 : f32
    %cst_3 = arith.constant 1.000000e+00 : f32
    %10 = vector.broadcast %cst_2 : f32 to vector<10x1xf32>
    %11 = arith.maximumf %10, %9 : vector<10x1xf32>
    %12 = vector.broadcast %cst_3 : f32 to vector<10x1xf32>
    %13 = arith.minimumf %12, %11 : vector<10x1xf32>
    %cst_4 = arith.constant 6.400000e+02 : f32
    %14 = vector.broadcast %cst_4 : f32 to vector<10x1xf32>
    %15 = arith.mulf %13, %14 : vector<10x1xf32>
    %c0_5 = arith.constant 0 : index
    %c0_6 = arith.constant 0 : index
    %16 = vector.load %arg1[%c0_5, %c0_6] : memref<10x4xf32, #tpu.memory_space<vmem>>, vector<10x1xf32>
    tpu.vector_store %arg1[%c0_5, %c0_6], %15 {strides = array<i32>} : memref<10x4xf32, #tpu.memory_space<vmem>>, vector<10x1xf32>,
    %17 = arith.subf %2, %8 : vector<10x1xf32>
    %cst_7 = arith.constant 0.000000e+00 : f32
    %cst_8 = arith.constant 1.000000e+00 : f32
    %18 = vector.broadcast %cst_7 : f32 to vector<10x1xf32>
    %19 = arith.maximumf %18, %17 : vector<10x1xf32>
    %20 = vector.broadcast %cst_8 : f32 to vector<10x1xf32>
    %21 = arith.minimumf %20, %19 : vector<10x1xf32>
    %cst_9 = arith.constant 4.800000e+02 : f32
    %22 = vector.broadcast %cst_9 : f32 to vector<10x1xf32>
    %23 = arith.mulf %21, %22 : vector<10x1xf32>
    %c0_10 = arith.constant 0 : index
    %c1 = arith.constant 1 : index
    %24 = vector.load %arg1[%c0_10, %c1] : memref<10x4xf32, #tpu.memory_space<vmem>>, vector<10x1xf32>
    tpu.vector_store %arg1[%c0_10, %c1], %23 {strides = array<i32>} : memref<10x4xf32, #tpu.memory_space<vmem>>, vector<10x1xf32>,
    %25 = arith.addf %1, %5 : vector<10x1xf32>
    %cst_11 = arith.constant 0.000000e+00 : f32
    %cst_12 = arith.constant 1.000000e+00 : f32
    %26 = vector.broadcast %cst_11 : f32 to vector<10x1xf32>
    %27 = arith.maximumf %26, %25 : vector<10x1xf32>
    %28 = vector.broadcast %cst_12 : f32 to vector<10x1xf32>
    %29 = arith.minimumf %28, %27 : vector<10x1xf32>
    %cst_13 = arith.constant 6.400000e+02 : f32
    %30 = vector.broadcast %cst_13 : f32 to vector<10x1xf32>
    %31 = arith.mulf %29, %30 : vector<10x1xf32>
    %c0_14 = arith.constant 0 : index
    %c2 = arith.constant 2 : index
    %32 = vector.load %arg1[%c0_14, %c2] : memref<10x4xf32, #tpu.memory_space<vmem>>, vector<10x1xf32>
    tpu.vector_store %arg1[%c0_14, %c2], %31 {strides = array<i32>} : memref<10x4xf32, #tpu.memory_space<vmem>>, vector<10x1xf32>,
    %33 = arith.addf %2, %8 : vector<10x1xf32>
    %cst_15 = arith.constant 0.000000e+00 : f32
    %cst_16 = arith.constant 1.000000e+00 : f32
    %34 = vector.broadcast %cst_15 : f32 to vector<10x1xf32>
    %35 = arith.maximumf %34, %33 : vector<10x1xf32>
    %36 = vector.broadcast %cst_16 : f32 to vector<10x1xf32>
    %37 = arith.minimumf %36, %35 : vector<10x1xf32>
    %cst_17 = arith.constant 4.800000e+02 : f32
    %38 = vector.broadcast %cst_17 : f32 to vector<10x1xf32>
    %39 = arith.mulf %37, %38 : vector<10x1xf32>
    %c0_18 = arith.constant 0 : index
    %c3 = arith.constant 3 : index
    %40 = vector.load %arg1[%c0_18, %c3] : memref<10x4xf32, #tpu.memory_space<vmem>>, vector<10x1xf32>
    tpu.vector_store %arg1[%c0_18, %c3], %39 {strides = array<i32>} : memref<10x4xf32, #tpu.memory_space<vmem>>, vector<10x1xf32>,
    return
  }
}

</mosaic_0001>

<bundles_post_ra>
// kernel: tpu_custom_call.1
= control target key start
LH: loop header
LB: loop body
LE: loop exit
PB: predicated region body
PF: predicated region fallthrough
CT: control target
= control target key end

     0   :  { %s78_s10 = smov 126   ;;  %vm28_vm0 = vcmask 7168   ;;  %vm34_vm1 = vcmask 15368   ;;  %vm30_vm2 = vcmask 1024   ;;  %s79_s12 = smov 2   ;;  %vm36_vm3 = vcmask 9224   ;;  %s120_s0 = inlined_call_operand.vmem [shape: f32[10,4], index: 0, kind: input, shape index: {}]   ;;  %s121_s1 = inlined_call_operand.vmem [shape: f32[10,4], index: 1, kind: output, shape index: {}]  }
   0x1   :  { %v8_v0 = vld [vmem:[%s120_s0] sm:$0xff]  ;;  %v9_v1 = vld [vmem:[%s120_s0 + $0x8] sm:$0x3]  ;;  %vm54_vm4 = vcmask 23568   ;;  %vm68_vm5 = vcmask 31768   ;;  %vm56_vm6 = vcmask 17424  }
   0x2   :  { %v10_v2 = vmul.f32 0.5, %v8_v0  ;;  %v11_v3 = vmul.f32 0.5, %v9_v1  ;;  %vm70_vm7 = vcmask 25624  }
   0x4   :  { %14 = vrot.lane.b32.xlu0 %v10_v2, %s78_s10 }
   0x8   :  { %16 = vrot.lane.b32.xlu0 %v11_v3, %s78_s10 }
  0x76   :  { %v15_v4 = vpop.permute.xlu0 %14 }
  0x77   :  { %v20_v5 = vsub.f32 %v8_v0, %v15_v4  ;;  %v38_v6 = vadd.f32 %v15_v4, %v8_v0 }
  0x79   :  { %v22_v7 = vmax.f32 %v20_v5, 0.0  ;;  %v40_v8 = vmax.f32 %v38_v6, 0.0 }
  0x7a   :  { %v17_v9 = vpop.permute.xlu0 %16 }
  0x7b   :  { %v24_v10 = vmin.f32 %v22_v7, 1.0  ;;  %v42_v11 = vmin.f32 %v40_v8, 1.0  ;;  %v21_v12 = vsub.f32 %v9_v1, %v17_v9  ;;  %v39_v13 = vadd.f32 %v17_v9, %v9_v1 }
  0x7d   :  { %v26_v14 = vmul.f32 640.0, %v24_v10  ;;  %v32_v15 = vmul.f32 480.0, %v24_v10  ;;  %v23_v16 = vmax.f32 %v21_v12, 0.0  ;;  %v41_v17 = vmax.f32 %v39_v13, 0.0 }
  0x7e   :  { %v58_v18 = vmul.f32 480.0, %v42_v11  ;;  %v44_v19 = vmul.f32 640.0, %v42_v11 }
  0x7f   :  { %29 = vst.msk [vmem:[%s121_s1] sm:$0xff] %vm28_vm0, %v26_v14  ;;  %v25_v20 = vmin.f32 %v23_v16, 1.0  ;;  %v43_v21 = vmin.f32 %v41_v17, 1.0 }
  0x80   :  { %62 = vrot.lane.b32.xlu0 %v58_v18, %s79_s12  ;;  %48 = vrot.lane.b32.xlu1 %v44_v19, %s79_s12  ;;  %35 = vst.msk [vmem:[%s121_s1] sm:$0xff] %vm34_vm1, %v32_v15 }
  0x81   :  { %v27_v22 = vmul.f32 640.0, %v25_v20  ;;  %v33_v23 = vmul.f32 480.0, %v25_v20  ;;  %v45_v24 = vmul.f32 640.0, %v43_v21  ;;  %v59_v25 = vmul.f32 480.0, %v43_v21 }
  0x83   :  { %31 = vst.msk [vmem:[%s121_s1 + $0x8] sm:$0x3] %vm30_vm2, %v27_v22 }
  0x84   :  { %50 = vrot.lane.b32.xlu1 %v45_v24, %s79_s12  ;;  %37 = vst.msk [vmem:[%s121_s1 + $0x8] sm:$0x3] %vm36_vm3, %v33_v23 }
  0x88   :  { %64 = vrot.lane.b32.xlu1 %v59_v25, %s79_s12 }
  0xf2   :  { %v49_v26 = vpop.permute.xlu1 %48  ;;  %v63_v27 = vpop.permute.xlu0 %62 }
  0xf3   :  { %55 = vst.msk [vmem:[%s121_s1] sm:$0xff] %vm54_vm4, %v49_v26 }
  0xf4   :  { %69 = vst.msk [vmem:[%s121_s1] sm:$0xff] %vm68_vm5, %v63_v27 }
  0xf6   :  { %v51_v28 = vpop.permute.xlu1 %50 }
  0xf7   :  { %57 = vst.msk [vmem:[%s121_s1 + $0x8] sm:$0x3] %vm56_vm6, %v51_v28 }
  0xfa   :  { %v65_v29 = vpop.permute.xlu1 %64 }
  0xfb   :  { %71 = vst.msk [vmem:[%s121_s1 + $0x8] sm:$0x3] %vm70_vm7, %v65_v29 }

</bundles_post_ra>
